<compile_context>
chip_gen: v6e
topology: v6e:2x2x1
jax: 0.10.0
libtpu: 0.0.40
codegen_flags: <defaults>
</compile_context>

<pallas_src>
import jax
import jax.numpy as jnp
from jax import lax
from jax.experimental import pallas as pl
from jax.experimental.pallas import tpu as pltpu


_NEG_FILL = -1e30  # finite "-inf" for class-tail masking (avoids inf*0 NaNs)


def _round_up(x, m):
    return -(-x // m) * m


def _bf16_compute_ok():
    """bf16 VPU/EUP math only on v6e / v7x (v5e and older have no bf16 VPU)."""
    try:
        kind = jax.devices()[0].device_kind.lower()
    except Exception:
        return False
    return ("v6" in kind) or ("v7" in kind)


def _choose_tiles(rows, n_classes, itemsize):
    """Pick (tile_n, tile_c): ~4 MiB per logits buffer, divisor-friendly
    class tile, and >= 2 row tiles so v7x megacore splits the row axis."""
    max_tile_c = 2048
    if n_classes <= max_tile_c:
        tile_c = n_classes
    else:
        # prefer the largest multiple of 128 <= cap that divides n_classes so
        # the last-class-tile mask path disappears entirely
        tile_c = max_tile_c
        c = (max_tile_c // 128) * 128
        while c >= 128:
            if n_classes % c == 0:
                tile_c = c
                break
            c -= 128

    budget_bytes = 4 * 1024 * 1024                  # per (single) input buffer
    tile_n = budget_bytes // (tile_c * itemsize)
    tile_n = max(8, min(512, tile_n))
    tile_n -= tile_n % 8                            # sublane alignment
    if rows > 8:
        # ensure at least two row tiles (v7x: both TensorCores get work)
        half = _round_up(-(-rows // 2), 8)
        tile_n = min(tile_n, half)
    tile_n = min(tile_n, _round_up(rows, 8))
    tile_n = max(tile_n, 8)
    return tile_n, tile_c


def _make_ce_kernel(tile_n, tile_c, n_c_tiles, n_classes, n_rows,
                    compute_dtype, mask_last_c_tile):
    """CE kernel: online logsumexp over class tiles + in-kernel reduction of
    per-row losses to a per-row-tile (sum, count) pair."""
    acc_dtype = jnp.float32

    def kernel(logits_ref, labels_ref, out_ref, m_sc, l_sc, p_sc):
        i = pl.program_id(0)        # row-tile index   ("parallel")
        k = pl.program_id(1)        # class-tile index ("arbitrary"/reduction)

        @pl.when(k == 0)
        def _init():
            m_sc[...] = jnp.full((tile_n, 1), _NEG_FILL, acc_dtype)
            l_sc[...] = jnp.zeros((tile_n, 1), acc_dtype)
            p_sc[...] = jnp.zeros((tile_n, 1), acc_dtype)

        logits = logits_ref[...].astype(compute_dtype)     # (tile_n, tile_c)
        labels = labels_ref[...]                            # (tile_n, 1) int32

        col = lax.broadcasted_iota(jnp.int32, (tile_n, tile_c), 1)

        if mask_last_c_tile:
            # only the last class tile can run past n_classes; fold the tile
            # offset into the scalar bound instead of adding it to the iota
            limit = n_classes - k * tile_c
            logits = jnp.where(col < limit, logits, _NEG_FILL)

        # gather logits[r, labels[r]] restricted to this class tile (offset
        # folded into the (tile_n, 1) labels, not the (tile_n, tile_c) iota)
        labels_local = labels - k * tile_c
        p_sc[...] += jnp.sum(jnp.where(col == labels_local, logits, 0),
                             axis=-1, keepdims=True, dtype=acc_dtype)

        # online (flash) logsumexp across class tiles; running stats in f32,
        # the wide exp stays in compute_dtype (bf16 on v6e/v7x when possible)
        tile_max = jnp.max(logits, axis=-1, keepdims=True).astype(acc_dtype)
        m_prev = m_sc[...]
        m_new = jnp.maximum(m_prev, tile_max)
        e = jnp.exp(logits - m_new.astype(compute_dtype))
        l_sc[...] = (l_sc[...] * jnp.exp(m_prev - m_new)
                     + jnp.sum(e, axis=-1, keepdims=True, dtype=acc_dtype))
        m_sc[...] = m_new

        @pl.when(k == n_c_tiles - 1)
        def _finalize():
            loss = m_sc[...] + jnp.log(l_sc[...]) - p_sc[...]     # (tile_n, 1)
            row = i * tile_n + lax.broadcasted_iota(jnp.int32, (tile_n, 1), 0)
            # rows past n_rows are OOB garbage; labels outside [0, n_classes)
            # (incl. torch's ignore_index=-100) are dropped from sum & count.
            # Use where (not multiply) so garbage Inf/NaN cannot leak through.
            valid = (row < n_rows) & (labels >= 0) & (labels < n_classes)
            loss_sum = jnp.sum(jnp.where(valid, loss, 0.0),
                               axis=0, keepdims=True)              # (1, 1)
            cnt = jnp.sum(jnp.where(valid, 1.0, 0.0),
                          axis=0, keepdims=True)
            lane = lax.broadcasted_iota(jnp.int32, (8, 128), 1)
            out_ref[...] = (jnp.where(lane == 0, loss_sum, 0.0)
                            + jnp.where(lane == 1, cnt, 0.0))

    return kernel


def _ce_sum_count(logits, labels):
    """Cross-entropy (sum, count) over all rows with valid labels.

    Returns f32 scalars (loss_sum, valid_count)."""
    rows, n_classes = logits.shape
    itemsize = jnp.dtype(logits.dtype).itemsize
    tile_n, tile_c = _choose_tiles(rows, n_classes, itemsize)

    n_row_tiles = pl.cdiv(rows, tile_n)
    n_c_tiles = pl.cdiv(n_classes, tile_c)
    mask_last_c_tile = (n_classes % tile_c) != 0

    compute_dtype = (jnp.bfloat16
                     if (logits.dtype == jnp.bfloat16 and _bf16_compute_ok())
                     else jnp.float32)

    lab = labels.astype(jnp.int32).reshape(rows, 1)

    kernel = _make_ce_kernel(tile_n, tile_c, n_c_tiles, n_classes, rows,
                             compute_dtype, mask_last_c_tile)

    # TODO(synk): on v7x (compute-bound) the two wide lane reductions could be
    # offloaded to the idle MXU via a ones-matmul; kept on XLU for simplicity.
    out = pl.pallas_call(
        kernel,
        out_shape=jax.ShapeDtypeStruct((n_row_tiles * 8, 128), jnp.float32),
        grid_spec=pltpu.PrefetchScalarGridSpec(
            num_scalar_prefetch=0,
            grid=(n_row_tiles, n_c_tiles),
            in_specs=[
                pl.BlockSpec((tile_n, tile_c), lambda i, k: (i, k)),
                pl.BlockSpec((tile_n, 1), lambda i, k: (i, 0)),
            ],
            out_specs=pl.BlockSpec((8, 128), lambda i, k: (i, 0)),
            scratch_shapes=[pltpu.VMEM((tile_n, 1), jnp.float32)] * 3,
        ),
        compiler_params=pltpu.CompilerParams(
            dimension_semantics=("parallel", "arbitrary"),
            vmem_limit_bytes=32 * 1024 * 1024),
    )(logits, lab)

    res = out.reshape(n_row_tiles, 8, 128)[:, 0, :]
    return jnp.sum(res[:, 0]), jnp.sum(res[:, 1])


def cross_entropy_loss_forward(softmax_positive, label_positive,
                               softmax_negative, label_negative):
    """Mirrors CrossEntropyLoss.forward from the PyTorch spec."""
    c_neg = softmax_negative.shape[-1]
    # Two pallas_calls (one per branch): no concat copy of the logits in HBM.
    pos_sum, pos_cnt = _ce_sum_count(softmax_positive,
                                     label_positive.reshape(-1))
    neg_sum, neg_cnt = _ce_sum_count(softmax_negative.reshape(-1, c_neg),
                                     label_negative.reshape(-1))
    positive_loss = pos_sum / pos_cnt
    negative_loss = neg_sum / neg_cnt
    return (positive_loss + negative_loss) / 2.0


if __name__ == "__main__":
    key = jax.random.PRNGKey(0)
    k1, k2, k3, k4 = jax.random.split(key, 4)

    N, C = 8, 32          # positive branch: (N, C) logits, (N,) labels
    B, S = 2, 4           # negative branch: (B, S, C) logits, (B, S) labels

    softmax_positive = jax.random.normal(k1, (N, C), dtype=jnp.float32)
    label_positive = jax.random.randint(k2, (N,), 0, C, dtype=jnp.int32)
    softmax_negative = jax.random.normal(k3, (B, S, C), dtype=jnp.float32)
    label_negative = jax.random.randint(k4, (B, S), 0, C, dtype=jnp.int32)

    loss = jax.jit(cross_entropy_loss_forward)(
        softmax_positive, label_positive, softmax_negative, label_negative)
    jax.block_until_ready(loss)

    # sanity check against a pure-JAX reference
    def _ref_ce(logits, labels):
        logp = jax.nn.log_softmax(logits.astype(jnp.float32), axis=-1)
        picked = jnp.take_along_axis(logp, labels.astype(jnp.int32)[:, None],
                                     axis=-1)
        return -jnp.mean(picked)

    ref = (_ref_ce(softmax_positive, label_positive)
           + _ref_ce(softmax_negative.reshape(-1, C),
                     label_negative.reshape(-1))) / 2.0
    assert jnp.allclose(loss, ref, atol=1e-4, rtol=1e-4), (loss, ref)

    print("KERNEL_OK")
</pallas_src>

<mosaic_0001>
module attributes {stable_mosaic.version = 11 : i64} {
  func.func @kernel(%arg0: i32, %arg1: i32, %arg2: memref<8x32xf32, #tpu.memory_space<vmem>>, %arg3: memref<8x1xi32, #tpu.memory_space<vmem>>, %arg4: memref<8x128xf32, #tpu.memory_space<vmem>>, %arg5: memref<8x1xf32, #tpu.memory_space<vmem>>, %arg6: memref<8x1xf32, #tpu.memory_space<vmem>>, %arg7: memref<8x1xf32, #tpu.memory_space<vmem>>) attributes {dimension_semantics = [#tpu.dimension_semantics<parallel>, #tpu.dimension_semantics<arbitrary>], iteration_bounds = array<i64: 1, 1>, scalar_prefetch = 0 : i64, scratch_operands = 3 : i64, tpu.core_type = #tpu.core_type<tc>, window_params = [{transform_indices = @transform_0, window_bounds = array<i64: 8, 32>}, {transform_indices = @transform_1, window_bounds = array<i64: 8, 1>}, {transform_indices = @transform_2, window_bounds = array<i64: 8, 128>}]} {
    %c0_i32 = arith.constant 0 : i32
    %0 = arith.cmpi eq, %arg1, %c0_i32 : i32
    %1 = arith.extui %0 : i1 to i32
    %c0_i32_0 = arith.constant 0 : i32
    %2 = arith.cmpi ne, %1, %c0_i32_0 : i32
    scf.if %2 {
      %cst_21 = arith.constant -1.000000e+30 : f32
      %38 = vector.broadcast %cst_21 : f32 to vector<8x1xf32>
      %c0_22 = arith.constant 0 : index
      %c0_23 = arith.constant 0 : index
      %39 = vector.load %arg5[%c0_22, %c0_23] : memref<8x1xf32, #tpu.memory_space<vmem>>, vector<8x1xf32>
      tpu.vector_store %arg5[%c0_22, %c0_23], %38 {strides = array<i32>} : memref<8x1xf32, #tpu.memory_space<vmem>>, vector<8x1xf32>,
      %cst_24 = arith.constant 0.000000e+00 : f32
      %40 = vector.broadcast %cst_24 : f32 to vector<8x1xf32>
      %c0_25 = arith.constant 0 : index
      %c0_26 = arith.constant 0 : index
      %41 = vector.load %arg6[%c0_25, %c0_26] : memref<8x1xf32, #tpu.memory_space<vmem>>, vector<8x1xf32>
      tpu.vector_store %arg6[%c0_25, %c0_26], %40 {strides = array<i32>} : memref<8x1xf32, #tpu.memory_space<vmem>>, vector<8x1xf32>,
      %cst_27 = arith.constant 0.000000e+00 : f32
      %42 = vector.broadcast %cst_27 : f32 to vector<8x1xf32>
      %c0_28 = arith.constant 0 : index
      %c0_29 = arith.constant 0 : index
      %43 = vector.load %arg7[%c0_28, %c0_29] : memref<8x1xf32, #tpu.memory_space<vmem>>, vector<8x1xf32>
      tpu.vector_store %arg7[%c0_28, %c0_29], %42 {strides = array<i32>} : memref<8x1xf32, #tpu.memory_space<vmem>>, vector<8x1xf32>,
    } else {
    }
    %c0 = arith.constant 0 : index
    %c0_1 = arith.constant 0 : index
    %3 = vector.load %arg2[%c0, %c0_1] : memref<8x32xf32, #tpu.memory_space<vmem>>, vector<8x32xf32>
    %c0_2 = arith.constant 0 : index
    %c0_3 = arith.constant 0 : index
    %4 = vector.load %arg3[%c0_2, %c0_3] : memref<8x1xi32, #tpu.memory_space<vmem>>, vector<8x1xi32>
    %5 = tpu.iota {dimensions = array<i32: 1>} : vector<8x32xi32>
    %c32_i32 = arith.constant 32 : i32
    %6 = arith.muli %arg1, %c32_i32 : i32
    %7 = vector.broadcast %6 : i32 to vector<8x1xi32>
    %8 = arith.subi %4, %7 : vector<8x1xi32>
    %c0_4 = arith.constant 0 : index
    %c0_5 = arith.constant 0 : index
    %9 = vector.load %arg7[%c0_4, %c0_5] : memref<8x1xf32, #tpu.memory_space<vmem>>, vector<8x1xf32>
    %10 = vector.broadcast %8 : vector<8x1xi32> to vector<8x32xi32>
    %11 = arith.cmpi eq, %5, %10 : vector<8x32xi32>
    %c0_i32_6 = arith.constant 0 : i32
    %12 = arith.sitofp %c0_i32_6 : i32 to f32
    %13 = vector.broadcast %12 : f32 to vector<8x32xf32>
    %14 = arith.select %11, %3, %13 : vector<8x32xi1>, vector<8x32xf32>
    %cst = arith.constant dense<0.000000e+00> : vector<8xf32>
    %15 = vector.multi_reduction <add>, %14, %cst [1] : vector<8x32xf32> to vector<8xf32>
    %16 = vector.shape_cast %15 : vector<8xf32> to vector<8x1xf32>
    %17 = arith.addf %9, %16 : vector<8x1xf32>
    %c0_7 = arith.constant 0 : index
    %c0_8 = arith.constant 0 : index
    %18 = vector.load %arg7[%c0_7, %c0_8] : memref<8x1xf32, #tpu.memory_space<vmem>>, vector<8x1xf32>
    tpu.vector_store %arg7[%c0_7, %c0_8], %17 {strides = array<i32>} : memref<8x1xf32, #tpu.memory_space<vmem>>, vector<8x1xf32>,
    %cst_9 = arith.constant dense<0xFF800000> : vector<8xf32>
    %19 = vector.multi_reduction <maximumf>, %3, %cst_9 [1] : vector<8x32xf32> to vector<8xf32>
    %20 = vector.shape_cast %19 : vector<8xf32> to vector<8x1xf32>
    %c0_10 = arith.constant 0 : index
    %c0_11 = arith.constant 0 : index
    %21 = vector.load %arg5[%c0_10, %c0_11] : memref<8x1xf32, #tpu.memory_space<vmem>>, vector<8x1xf32>
    %22 = arith.maximumf %21, %20 : vector<8x1xf32>
    %23 = vector.broadcast %22 : vector<8x1xf32> to vector<8x32xf32>
    %24 = arith.subf %3, %23 : vector<8x32xf32>
    %25 = math.exp %24 : vector<8x32xf32>
    %c0_12 = arith.constant 0 : index
    %c0_13 = arith.constant 0 : index
    %26 = vector.load %arg6[%c0_12, %c0_13] : memref<8x1xf32, #tpu.memory_space<vmem>>, vector<8x1xf32>
    %27 = arith.subf %21, %22 : vector<8x1xf32>
    %28 = math.exp %27 : vector<8x1xf32>
    %29 = arith.mulf %26, %28 : vector<8x1xf32>
    %cst_14 = arith.constant dense<0.000000e+00> : vector<8xf32>
    %30 = vector.multi_reduction <add>, %25, %cst_14 [1] : vector<8x32xf32> to vector<8xf32>
    %31 = vector.shape_cast %30 : vector<8xf32> to vector<8x1xf32>
    %32 = arith.addf %29, %31 : vector<8x1xf32>
    %c0_15 = arith.constant 0 : index
    %c0_16 = arith.constant 0 : index
    %33 = vector.load %arg6[%c0_15, %c0_16] : memref<8x1xf32, #tpu.memory_space<vmem>>, vector<8x1xf32>
    tpu.vector_store %arg6[%c0_15, %c0_16], %32 {strides = array<i32>} : memref<8x1xf32, #tpu.memory_space<vmem>>, vector<8x1xf32>,
    %c0_17 = arith.constant 0 : index
    %c0_18 = arith.constant 0 : index
    %34 = vector.load %arg5[%c0_17, %c0_18] : memref<8x1xf32, #tpu.memory_space<vmem>>, vector<8x1xf32>
    tpu.vector_store %arg5[%c0_17, %c0_18], %22 {strides = array<i32>} : memref<8x1xf32, #tpu.memory_space<vmem>>, vector<8x1xf32>,
    %c0_i32_19 = arith.constant 0 : i32
    %35 = arith.cmpi eq, %arg1, %c0_i32_19 : i32
    %36 = arith.extui %35 : i1 to i32
    %c0_i32_20 = arith.constant 0 : i32
    %37 = arith.cmpi ne, %36, %c0_i32_20 : i32
    scf.if %37 {
      %c0_21 = arith.constant 0 : index
      %c0_22 = arith.constant 0 : index
      %38 = vector.load %arg5[%c0_21, %c0_22] : memref<8x1xf32, #tpu.memory_space<vmem>>, vector<8x1xf32>
      %c0_23 = arith.constant 0 : index
      %c0_24 = arith.constant 0 : index
      %39 = vector.load %arg6[%c0_23, %c0_24] : memref<8x1xf32, #tpu.memory_space<vmem>>, vector<8x1xf32>
      %40 = math.log %39 : vector<8x1xf32>
      %41 = arith.addf %38, %40 : vector<8x1xf32>
      %c0_25 = arith.constant 0 : index
      %c0_26 = arith.constant 0 : index
      %42 = vector.load %arg7[%c0_25, %c0_26] : memref<8x1xf32, #tpu.memory_space<vmem>>, vector<8x1xf32>
      %43 = arith.subf %41, %42 : vector<8x1xf32>
      %c8_i32 = arith.constant 8 : i32
      %44 = arith.muli %arg0, %c8_i32 : i32
      %45 = tpu.iota {dimensions = array<i32: 0>} : vector<8x1xi32>
      %46 = vector.broadcast %44 : i32 to vector<8x1xi32>
      %47 = arith.addi %46, %45 : vector<8x1xi32>
      %c8_i32_27 = arith.constant 8 : i32
      %48 = vector.broadcast %c8_i32_27 : i32 to vector<8x1xi32>
      %49 = arith.cmpi slt, %47, %48 : vector<8x1xi32>
      %c0_i32_28 = arith.constant 0 : i32
      %50 = vector.broadcast %c0_i32_28 : i32 to vector<8x1xi32>
      %51 = arith.cmpi sge, %4, %50 : vector<8x1xi32>
      %52 = arith.andi %49, %51 : vector<8x1xi1>
      %c32_i32_29 = arith.constant 32 : i32
      %53 = vector.broadcast %c32_i32_29 : i32 to vector<8x1xi32>
      %54 = arith.cmpi slt, %4, %53 : vector<8x1xi32>
      %55 = arith.andi %52, %54 : vector<8x1xi1>
      %cst_30 = arith.constant 0.000000e+00 : f32
      %56 = vector.broadcast %cst_30 : f32 to vector<8x1xf32>
      %57 = arith.select %55, %43, %56 : vector<8x1xi1>, vector<8x1xf32>
      %cst_31 = arith.constant dense<0.000000e+00> : vector<1xf32>
      %58 = vector.multi_reduction <add>, %57, %cst_31 [0] : vector<8x1xf32> to vector<1xf32>
      %59 = vector.shape_cast %58 : vector<1xf32> to vector<1x1xf32>
      %cst_32 = arith.constant 1.000000e+00 : f32
      %cst_33 = arith.constant 0.000000e+00 : f32
      %60 = vector.broadcast %cst_32 : f32 to vector<8x1xf32>
      %61 = vector.broadcast %cst_33 : f32 to vector<8x1xf32>
      %62 = arith.select %55, %60, %61 : vector<8x1xi1>, vector<8x1xf32>
      %cst_34 = arith.constant dense<0.000000e+00> : vector<1xf32>
      %63 = vector.multi_reduction <add>, %62, %cst_34 [0] : vector<8x1xf32> to vector<1xf32>
      %64 = vector.shape_cast %63 : vector<1xf32> to vector<1x1xf32>
      %65 = tpu.iota {dimensions = array<i32: 1>} : vector<8x128xi32>
      %c0_i32_35 = arith.constant 0 : i32
      %66 = vector.broadcast %c0_i32_35 : i32 to vector<8x128xi32>
      %67 = arith.cmpi eq, %65, %66 : vector<8x128xi32>
      %cst_36 = arith.constant 0.000000e+00 : f32
      %68 = vector.shape_cast %59 : vector<1x1xf32> to vector<1x1xf32>
      %69 = vector.broadcast %68 : vector<1x1xf32> to vector<8x128xf32>
      %70 = vector.broadcast %cst_36 : f32 to vector<8x128xf32>
      %71 = arith.select %67, %69, %70 : vector<8x128xi1>, vector<8x128xf32>
      %c1_i32 = arith.constant 1 : i32
      %72 = vector.broadcast %c1_i32 : i32 to vector<8x128xi32>
      %73 = arith.cmpi eq, %65, %72 : vector<8x128xi32>
      %cst_37 = arith.constant 0.000000e+00 : f32
      %74 = vector.shape_cast %64 : vector<1x1xf32> to vector<1x1xf32>
      %75 = vector.broadcast %74 : vector<1x1xf32> to vector<8x128xf32>
      %76 = vector.broadcast %cst_37 : f32 to vector<8x128xf32>
      %77 = arith.select %73, %75, %76 : vector<8x128xi1>, vector<8x128xf32>
      %78 = arith.addf %71, %77 : vector<8x128xf32>
      %c0_38 = arith.constant 0 : index
      %c0_39 = arith.constant 0 : index
      %79 = vector.load %arg4[%c0_38, %c0_39] : memref<8x128xf32, #tpu.memory_space<vmem>>, vector<8x128xf32>
      tpu.vector_store %arg4[%c0_38, %c0_39], %78 {strides = array<i32>} : memref<8x128xf32, #tpu.memory_space<vmem>>, vector<8x128xf32>,
    } else {
    }
    return
  }
  func.func @transform_0(%arg0: i32, %arg1: i32) -> (i32, i32) {
    %c0_i32 = arith.constant 0 : i32
    return %arg0, %arg1 : i32, i32
  }
  func.func @transform_1(%arg0: i32, %arg1: i32) -> (i32, i32) {
    %c0_i32 = arith.constant 0 : i32
    %c0_i32_0 = arith.constant 0 : i32
    return %arg0, %c0_i32 : i32, i32
  }
  func.func @transform_2(%arg0: i32, %arg1: i32) -> (i32, i32) {
    %c0_i32 = arith.constant 0 : i32
    %c0_i32_0 = arith.constant 0 : i32
    return %arg0, %c0_i32 : i32, i32
  }
}

</mosaic_0001>

<bundles_post_ra>
// kernel: cross_entropy_loss_forward.2
= control target key start
LH: loop header
LB: loop body
LE: loop exit
PB: predicated region body
PF: predicated region fallthrough
CT: control target
= control target key end

     0   :  { %vm32_vm0 = vcmask 261120   ;;  %vm15_vm1 = vcmask 7168   ;;  %v130_v1 = vmov -1e+30   ;;  %v131_v3 = vmov 0.0   ;;  %s176_s0 = inlined_call_operand.vmem [shape: f32[8,32], index: 0, kind: input, shape index: {}]   ;;  %s177_s1 = inlined_call_operand.vmem [shape: s32[8,1], index: 1, kind: input, shape index: {}]   ;;  %s178_s2 = inlined_call_operand.vmem [shape: f32[8,128], index: 2, kind: output, shape index: {}]  }
   0x1   :  { %v19_v0 = vld [vmem:[%s176_s0] sm:$0xff]  ;;  %16 = vst.msk [vmem:[#allocation2] sm:$0xff] %vm15_vm1, %v130_v1  ;;  %17 = vst.msk [vmem:[#allocation3] sm:$0xff] %vm15_vm1, %v131_v3  ;;  %v132_v4 = vmov 0   ;;  %v21_v22 = vlaneseq }
   0x2   :  { %v39_v2 = vsel %vm32_vm0, %v19_v0, -inf  ;;  %18 = vst.msk [vmem:[#allocation4] sm:$0xff] %vm15_vm1, %v131_v3  ;;  %122 = vset.pattern.permute.xlu0 %v132_v4  ;;  %v20_v5 = vld [vmem:[%s177_s1] sm:$0xff]  ;;  %123 = vset.pattern.permute.xlu1 %v132_v4 }
   0x3   :  { %40 = vmax.xlane.f32.xlu0 %v39_v2  ;;  %28 = vperm.xlu1 %123, %v20_v5   ;;  %vm79_vm2 = vcmp.ge.s32.totalorder %v20_v5, 0  ;;  %vm81_vm3 = vcmp.lt.s32.totalorder %v20_v5, 32  ;;  %v22_v24 = vand.u32 127, %v21_v22 }
   0x4   :  { %vm158_vm4 = vmand %vm79_vm2, %vm81_vm3 }
   0x5   :  { %v91_v7 = vsel %vm158_vm4, 1.0, %v131_v3  ;;  %vm106_vm6 = vcmp.eq.s32.totalorder %v22_v24, 1  ;;  %vm99_vm7 = vcmp.eq.s32.totalorder %v22_v24, 0 }
   0x6   :  { %v92_v8 = vsel %vm15_vm1, %v91_v7, 0.0 }
   0x7   :  { %v93_v9 = vrot.slane %v92_v8, 4 }
   0x8   :  { %v42_v13 = vld [vmem:[#allocation2] sm:$0xff]  ;;  %v52_v31 = vld [vmem:[#allocation3] sm:$0xff] }
   0x9   :  { %v94_v10 = vadd.f32 %v93_v9, %v92_v8  ;;  %v26_v35 = vld [vmem:[#allocation4] sm:$0xff] }
   0xb   :  { %v95_v11 = vrot.slane %v94_v10, 2 }
   0xd   :  { %v96_v12 = vadd.f32 %v95_v11, %v94_v10 }
   0xf   :  { %v97_v14 = vrot.slane %v96_v12, 1 }
  0x11   :  { %v98_v18 = vadd.f32 %v97_v14, %v96_v12 }
  0x7e   :  { %v29_v23 = vpop.permute.xlu1 %28 }
  0x7f   :  { %vm30_vm5 = vcmp.eq.s32.totalorder %v22_v24, %v29_v23 }
  0x80   :  { %v31_v26 = vsel %vm30_vm5, %v19_v0, 0.0 }
  0x81   :  { %v33_v28 = vsel %vm32_vm0, %v31_v26, 0.0 }
  0x8c   :  { %v41_v15 = vpop.xlane.xlu0 %40 }
  0x8d   :  { %v43_v16 = vmax.f32 %v42_v13, %v41_v15 }
  0x8f   :  { %v53_v17 = vsub.f32 %v42_v13, %v43_v16  ;;  %62 = vst.msk [vmem:[#allocation2] sm:$0xff] %vm15_vm1, %v43_v16  ;;  %46 = vperm.xlu0 %122, %v43_v16  }
  0x91   :  { %v54_v29 = vmul.f32 1.442695, %v53_v17 }
  0x93   :  { %109 = vperm.xlu0 %122, %v98_v18  }
  0x96   :  { %v66_v41 = vld [vmem:[#allocation2] sm:$0xff] }
 0x10a   :  { %v47_v19 = vpop.permute.xlu0 %46 }
 0x10b   :  { %v49_v20 = vsub.f32 %v19_v0, %v47_v19 }
 0x10d   :  { %v50_v21 = vmul.f32 1.442695, %v49_v20 }
 0x10e   :  { %v110_v53 = vpop.permute.xlu0 %109 }
 0x10f   :  { %124 = vpow2.f32 %v50_v21  ;;  %v112_v55 = vsel %vm106_vm6, %v110_v53, 0.0 }
 0x110   :  { %126 = vpow2.f32 %v54_v29 }
 0x11c   :  { %v125_v25 = vpop.eup %124 }
 0x11d   :  { %v57_v27 = vsel %vm32_vm0, %v125_v25, 0.0  ;;  %v127_v30 = vpop.eup %126 }
 0x11e   :  { %58 = vadd.xlane.f32.xlu1 %v57_v27  ;;  %v56_v32 = vmul.f32 %v127_v30, %v52_v31 }
 0x122   :  { %34 = vadd.xlane.f32.xlu1 %v33_v28 }
 0x1a7   :  { %v59_v33 = vpop.xlane.xlu1 %58 }
 0x1a8   :  { %v60_v34 = vadd.f32 %v59_v33, %v56_v32 }
 0x1aa   :  { %61 = vst.msk [vmem:[#allocation3] sm:$0xff] %vm15_vm1, %v60_v34 }
 0x1ab   :  { %v35_v36 = vpop.xlane.xlu1 %34 }
 0x1ac   :  { %v36_v37 = vadd.f32 %v35_v36, %v26_v35 }
 0x1ae   :  { %38 = vst.msk [vmem:[#allocation4] sm:$0xff] %vm15_vm1, %v36_v37 }
 0x1b1   :  { %v67_v38 = vld [vmem:[#allocation3] sm:$0xff] }
 0x1b2   :  { %128 = vlog2.f32 %v67_v38 }
 0x1b5   :  { %v71_v42 = vld [vmem:[#allocation4] sm:$0xff] }
 0x1bf   :  { %v129_v39 = vpop.eup %128 }
 0x1c0   :  { %v69_v40 = vmul.f32 0.6931472, %v129_v39 }
 0x1c2   :  { %v70_v43 = vadd.f32 %v69_v40, %v66_v41 }
 0x1c4   :  { %v72_v44 = vsub.f32 %v70_v43, %v71_v42 }
 0x1c6   :  { %v83_v45 = vsel %vm158_vm4, %v72_v44, 0.0 }
 0x1c7   :  { %v84_v46 = vsel %vm15_vm1, %v83_v45, 0.0 }
 0x1c8   :  { %v85_v47 = vrot.slane %v84_v46, 4 }
 0x1ca   :  { %v86_v48 = vadd.f32 %v85_v47, %v84_v46 }
 0x1cc   :  { %v87_v49 = vrot.slane %v86_v48, 2 }
 0x1ce   :  { %v88_v50 = vadd.f32 %v87_v49, %v86_v48 }
 0x1d0   :  { %v89_v51 = vrot.slane %v88_v50, 1 }
 0x1d2   :  { %v90_v52 = vadd.f32 %v89_v51, %v88_v50 }
 0x1d4   :  { %102 = vperm.xlu1 %123, %v90_v52  }
 0x24f   :  { %v103_v54 = vpop.permute.xlu1 %102 }
 0x250   :  { %v105_v56 = vsel %vm99_vm7, %v103_v54, 0.0 }
 0x251   :  { %v113_v57 = vadd.f32 %v112_v55, %v105_v56 }
 0x253   :  { %114 = vst [vmem:[%s178_s2] sm:$0xff] %v113_v57 }

</bundles_post_ra>
